<compile_context>
chip_gen: v6e
topology: v6e:2x2x1
jax: 0.10.0
libtpu: 0.0.40
codegen_flags: <defaults>
</compile_context>

<pallas_src>
import functools

import jax
import jax.numpy as jnp
from jax.experimental import pallas as pl
from jax.experimental.pallas import tpu as pltpu


# --------------------------------------------------------------------------
# Kernels: streamed aggregation  relu(A_hat @ H + b)  [optionally + fc head]
# --------------------------------------------------------------------------
def _aggregate_kernel(a_ref, h_ref, b_ref, o_ref, acc_ref):
    """relu(A_hat @ H + b) for one row tile, accumulated over k tiles."""
    k = pl.program_id(1)

    @pl.when(k == 0)
    def _():
        acc_ref[...] = jnp.zeros_like(acc_ref)

    # bf16 MXU operands, f32 accumulation.
    acc_ref[...] += jnp.dot(a_ref[...], h_ref[...],
                            preferred_element_type=jnp.float32)

    @pl.when(k == pl.num_programs(1) - 1)
    def _():
        y = jnp.maximum(acc_ref[...] + b_ref[...], 0.0)      # bias + ReLU, f32
        o_ref[...] = y.astype(o_ref.dtype)


def _aggregate_fc_kernel(a_ref, h_ref, b_ref, wfc_ref, bfc_ref, o_ref, acc_ref):
    """(relu(A_hat @ H + b)) @ Wfc + bfc — layer 2 fused with the Linear head."""
    k = pl.program_id(1)

    @pl.when(k == 0)
    def _():
        acc_ref[...] = jnp.zeros_like(acc_ref)

    acc_ref[...] += jnp.dot(a_ref[...], h_ref[...],
                            preferred_element_type=jnp.float32)

    @pl.when(k == pl.num_programs(1) - 1)
    def _():
        y = jnp.maximum(acc_ref[...] + b_ref[...], 0.0)      # f32
        out = jnp.dot(y.astype(jnp.bfloat16), wfc_ref[...],
                      preferred_element_type=jnp.float32) + bfc_ref[...]
        o_ref[...] = out.astype(o_ref.dtype)


# --------------------------------------------------------------------------
# pallas_call wrapper for the aggregation of one GCN layer
# --------------------------------------------------------------------------
def _aggregate(a_bf16, h_bf16, b_f32, *, tm, tk, fc=None,
               out_dtype=jnp.bfloat16):
    n = a_bf16.shape[0]
    hid_p = h_bf16.shape[1]
    assert n % tm == 0 and n % tk == 0, (n, tm, tk)
    grid = (n // tm, n // tk)

    in_specs = [
        pl.BlockSpec((tm, tk), lambda i, k: (i, k)),       # A_hat row/col tile
        pl.BlockSpec((tk, hid_p), lambda i, k: (k, 0)),    # transformed feats
        pl.BlockSpec((1, hid_p), lambda i, k: (0, 0)),     # layer bias
    ]
    args = [a_bf16, h_bf16, b_f32]

    if fc is None:
        kernel = _aggregate_kernel
        out_dim = hid_p
        flops = 2 * n * n * hid_p
    else:
        wfc_p, bfc_p = fc
        out_dim = wfc_p.shape[1]
        in_specs += [
            pl.BlockSpec((hid_p, out_dim), lambda i, k: (0, 0)),   # fc weight
            pl.BlockSpec((1, out_dim), lambda i, k: (0, 0)),       # fc bias
        ]
        args += [wfc_p, bfc_p]
        kernel = _aggregate_fc_kernel
        flops = 2 * n * n * hid_p + 2 * n * hid_p * out_dim

    out_bytes = n * out_dim * (4 if out_dtype == jnp.float32 else 2)
    bytes_accessed = 2 * n * n + 2 * n * hid_p + 4 * hid_p + out_bytes

    return pl.pallas_call(
        kernel,
        out_shape=jax.ShapeDtypeStruct((n, out_dim), out_dtype),
        grid_spec=pltpu.PrefetchScalarGridSpec(
            num_scalar_prefetch=0,
            grid=grid,
            in_specs=in_specs,
            out_specs=pl.BlockSpec((tm, out_dim), lambda i, k: (i, 0)),
            scratch_shapes=[pltpu.VMEM((tm, hid_p), jnp.float32)],
        ),
        compiler_params=pltpu.CompilerParams(
            dimension_semantics=("parallel", "arbitrary")),
        cost_estimate=pl.CostEstimate(
            flops=int(flops), transcendentals=0,
            bytes_accessed=int(bytes_accessed)),
    )(*args)


# --------------------------------------------------------------------------
# Helpers
# --------------------------------------------------------------------------
def _round_up(x, m):
    return ((x + m - 1) // m) * m


def _pad_axis(x, target, axis):
    pad = target - x.shape[axis]
    if pad <= 0:
        return x
    widths = [(0, 0)] * x.ndim
    widths[axis] = (0, pad)
    return jnp.pad(x, widths)


def _pick_tiles(n):
    # Aim for large A tiles (0.5-2 MiB bf16) but keep >=2 row tiles so the
    # "parallel" axis can shard across v7x's two TensorCores.
    tm = min(512, n)
    if n >= 256 and n // tm < 2:
        tm = n // 2
    tk = min(512, n)
    return tm, tk


# --------------------------------------------------------------------------
# GCNConv normalization (gcn_norm): add_remaining_self_loops + sym. norm.
# --------------------------------------------------------------------------
def _gcn_norm_dense(edge_index, edge_weight, n):
    src = edge_index[0]
    dst = edge_index[1]
    ew = edge_weight.astype(jnp.float32)

    # add_remaining_self_loops: only add a unit self-loop for nodes that do
    # not already have one (existing self-loops keep their weight).
    loop_mask = (src == dst).astype(jnp.float32)
    has_loop = jnp.zeros((n,), jnp.float32).at[src].max(loop_mask)
    loop_w = 1.0 - has_loop

    idx = jnp.arange(n, dtype=src.dtype)
    src_a = jnp.concatenate([src, idx])
    dst_a = jnp.concatenate([dst, idx])
    ew_a = jnp.concatenate([ew, loop_w])

    deg = jnp.zeros((n,), jnp.float32).at[dst_a].add(ew_a)
    dinv = jnp.where(deg > 0, jax.lax.rsqrt(deg), 0.0)
    norm = dinv[src_a] * ew_a * dinv[dst_a]
    # A_hat[dst, src] = D^{-1/2} (A + I_remaining) D^{-1/2}
    return jnp.zeros((n, n), jnp.float32).at[dst_a, src_a].add(norm)


# --------------------------------------------------------------------------
# Full GCN forward: gcn1 -> relu -> (dropout=id) -> gcn2 -> relu -> (id) -> fc
# --------------------------------------------------------------------------
@functools.partial(jax.jit, static_argnames=("tm", "tk"))
def gcn_forward(x, edge_index, edge_weight, params, *, tm=None, tk=None):
    n = x.shape[0]
    w1, b1, w2, b2, wfc, bfc = params
    hid = w1.shape[1]
    out_dim = wfc.shape[1]
    hid_p = _round_up(hid, 128)       # lane-dense hidden width
    out_p = _round_up(out_dim, 128)   # lane-dense head width

    if tm is None or tk is None:
        tm, tk = _pick_tiles(n)

    # Normalized adjacency, cast to bf16 immediately (single N^2 bf16 slab
    # streamed through both layer kernels).
    a_bf16 = _gcn_norm_dense(edge_index, edge_weight, n).astype(jnp.bfloat16)
    x_bf = x.astype(jnp.bfloat16)

    # ---- Layer 1: hoisted transform (tiny, plain XLA) + Pallas aggregation.
    w1_p = _pad_axis(w1.astype(jnp.bfloat16), hid_p, 1)
    b1_p = _pad_axis(b1.astype(jnp.float32), hid_p, 0).reshape(1, -1)
    h1t = jnp.dot(x_bf, w1_p,
                  preferred_element_type=jnp.float32).astype(jnp.bfloat16)
    h1 = _aggregate(a_bf16, h1t, b1_p, tm=tm, tk=tk,
                    out_dtype=jnp.bfloat16)              # relu(A@h1t + b1)
    # dropout: identity (eval mode)

    # ---- Layer 2 (+ fused fc head).
    w2_p = _pad_axis(_pad_axis(w2.astype(jnp.bfloat16), hid_p, 0), hid_p, 1)
    b2_p = _pad_axis(b2.astype(jnp.float32), hid_p, 0).reshape(1, -1)
    h2t = jnp.dot(h1, w2_p,
                  preferred_element_type=jnp.float32).astype(jnp.bfloat16)
    wfc_p = _pad_axis(_pad_axis(wfc.astype(jnp.bfloat16), hid_p, 0), out_p, 1)
    bfc_p = _pad_axis(bfc.astype(jnp.float32), out_p, 0).reshape(1, -1)
    out_padded = _aggregate(a_bf16, h2t, b2_p, tm=tm, tk=tk,
                            fc=(wfc_p, bfc_p), out_dtype=jnp.float32)
    return out_padded[:, :out_dim]


# --------------------------------------------------------------------------
# Pure-JAX reference mirroring kernel numerics (bf16 operands, f32 accumulate)
# --------------------------------------------------------------------------
def _reference(x, edge_index, edge_weight, params):
    n = x.shape[0]
    w1, b1, w2, b2, wfc, bfc = params
    a = _gcn_norm_dense(edge_index, edge_weight, n).astype(jnp.bfloat16)
    xb = x.astype(jnp.bfloat16)

    h = jnp.dot(xb, w1.astype(jnp.bfloat16),
                preferred_element_type=jnp.float32).astype(jnp.bfloat16)
    h1 = jnp.maximum(jnp.dot(a, h, preferred_element_type=jnp.float32) + b1,
                     0.0).astype(jnp.bfloat16)

    h = jnp.dot(h1, w2.astype(jnp.bfloat16),
                preferred_element_type=jnp.float32).astype(jnp.bfloat16)
    h2 = jnp.maximum(jnp.dot(a, h, preferred_element_type=jnp.float32) + b2,
                     0.0)

    return jnp.dot(h2.astype(jnp.bfloat16), wfc.astype(jnp.bfloat16),
                   preferred_element_type=jnp.float32) + bfc


if __name__ == "__main__":
    N, FIN, HID, OUT, E = 256, 3, 32, 1, 1024

    key = jax.random.PRNGKey(0)
    ks = jax.random.split(key, 10)

    x = jax.random.normal(ks[0], (N, FIN), dtype=jnp.float32)
    edge_index = jnp.stack([
        jax.random.randint(ks[1], (E,), 0, N),
        jax.random.randint(ks[2], (E,), 0, N),
    ], axis=0)                                             # (2, E)
    edge_weight = jax.random.uniform(ks[3], (E,), dtype=jnp.float32)

    # Deterministic synthetic parameters (shapes as defined by the module).
    w1 = 0.2 * jax.random.normal(ks[4], (FIN, HID), dtype=jnp.float32)
    b1 = 0.1 * jax.random.normal(ks[5], (HID,), dtype=jnp.float32)
    w2 = 0.2 * jax.random.normal(ks[6], (HID, HID), dtype=jnp.float32)
    b2 = 0.1 * jax.random.normal(ks[7], (HID,), dtype=jnp.float32)
    wfc = 0.2 * jax.random.normal(ks[8], (HID, OUT), dtype=jnp.float32)
    bfc = 0.1 * jax.random.normal(ks[9], (OUT,), dtype=jnp.float32)
    params = (w1, b1, w2, b2, wfc, bfc)

    out = gcn_forward(x, edge_index, edge_weight, params)
    out = jax.block_until_ready(out)

    ref = _reference(x, edge_index, edge_weight, params)
    assert out.shape == (N, OUT), out.shape
    assert jnp.allclose(out, ref, rtol=2e-3, atol=2e-3), (out[:4], ref[:4])

    print("KERNEL_OK")
</pallas_src>

<mosaic_0001>
module attributes {stable_mosaic.version = 11 : i64} {
  func.func private @main(%arg0: i32) attributes {dimension_semantics = [#tpu.dimension_semantics<core_parallel>], iteration_bounds = array<i64: 2>, tpu.core_type = #tpu.core_type<sc_scalar_subcore>, window_params = []} {
    return
  }
}

module attributes {stable_mosaic.version = 11 : i64} {
  func.func private @main(%arg0: i32) attributes {dimension_semantics = [#tpu.dimension_semantics<core_parallel>], iteration_bounds = array<i64: 2>, tpu.core_type = #tpu.core_type<sc_scalar_subcore>, window_params = []} {
    return
  }
}

module attributes {stable_mosaic.version = 11 : i64} {
  func.func @_aggregate_kernel(%arg0: i32, %arg1: i32, %arg2: memref<128x256xbf16, #tpu.memory_space<vmem>>, %arg3: memref<256x128xbf16, #tpu.memory_space<vmem>>, %arg4: memref<1x128xf32, #tpu.memory_space<vmem>>, %arg5: memref<128x128xbf16, #tpu.memory_space<vmem>>, %arg6: memref<128x128xf32, #tpu.memory_space<vmem>>) attributes {dimension_semantics = [#tpu.dimension_semantics<parallel>, #tpu.dimension_semantics<arbitrary>], iteration_bounds = array<i64: 2, 1>, scalar_prefetch = 0 : i64, scratch_operands = 1 : i64, tpu.core_type = #tpu.core_type<tc>, window_params = [{transform_indices = @transform_0, window_bounds = array<i64: 128, 256>}, {transform_indices = @transform_1, window_bounds = array<i64: 256, 128>}, {pipeline_mode = #tpu.pipeline_mode<synchronous>, transform_indices = @transform_2, window_bounds = array<i64: 1, 128>}, {transform_indices = @transform_3, window_bounds = array<i64: 128, 128>}]} {
    %c0_i32 = arith.constant 0 : i32
    %0 = arith.cmpi eq, %arg1, %c0_i32 : i32
    %1 = arith.extui %0 : i1 to i32
    %c0_i32_0 = arith.constant 0 : i32
    %2 = arith.cmpi ne, %1, %c0_i32_0 : i32
    scf.if %2 {
      %cst_10 = arith.constant 0.000000e+00 : f32
      %12 = vector.broadcast %cst_10 : f32 to vector<128x128xf32>
      %c0_11 = arith.constant 0 : index
      %c0_12 = arith.constant 0 : index
      %13 = vector.load %arg6[%c0_11, %c0_12] : memref<128x128xf32, #tpu.memory_space<vmem>>, vector<128x128xf32>
      tpu.vector_store %arg6[%c0_11, %c0_12], %12 {strides = array<i32>} : memref<128x128xf32, #tpu.memory_space<vmem>>, vector<128x128xf32>,
    } else {
    }
    %c0 = arith.constant 0 : index
    %c0_1 = arith.constant 0 : index
    %3 = vector.load %arg6[%c0, %c0_1] : memref<128x128xf32, #tpu.memory_space<vmem>>, vector<128x128xf32>
    %c0_2 = arith.constant 0 : index
    %c0_3 = arith.constant 0 : index
    %4 = vector.load %arg2[%c0_2, %c0_3] : memref<128x256xbf16, #tpu.memory_space<vmem>>, vector<128x256xbf16>
    %c0_4 = arith.constant 0 : index
    %c0_5 = arith.constant 0 : index
    %5 = vector.load %arg3[%c0_4, %c0_5] : memref<256x128xbf16, #tpu.memory_space<vmem>>, vector<256x128xbf16>
    %cst = arith.constant dense<0.000000e+00> : vector<128x128xf32>
    %6 = tpu.matmul %4, %5, %cst {dimension_numbers = #tpu.dot_dimension_numbers<[1], [0], [0], [1], [0, 0, 1, 1], [], []>} : vector<128x256xbf16>, vector<256x128xbf16>, vector<128x128xf32> -> vector<128x128xf32>
    %7 = arith.addf %3, %6 : vector<128x128xf32>
    %c0_6 = arith.constant 0 : index
    %c0_7 = arith.constant 0 : index
    %8 = vector.load %arg6[%c0_6, %c0_7] : memref<128x128xf32, #tpu.memory_space<vmem>>, vector<128x128xf32>
    tpu.vector_store %arg6[%c0_6, %c0_7], %7 {strides = array<i32>} : memref<128x128xf32, #tpu.memory_space<vmem>>, vector<128x128xf32>,
    %c0_i32_8 = arith.constant 0 : i32
    %9 = arith.cmpi eq, %arg1, %c0_i32_8 : i32
    %10 = arith.extui %9 : i1 to i32
    %c0_i32_9 = arith.constant 0 : i32
    %11 = arith.cmpi ne, %10, %c0_i32_9 : i32
    scf.if %11 {
      %c0_10 = arith.constant 0 : index
      %c0_11 = arith.constant 0 : index
      %12 = vector.load %arg6[%c0_10, %c0_11] : memref<128x128xf32, #tpu.memory_space<vmem>>, vector<128x128xf32>
      %c0_12 = arith.constant 0 : index
      %c0_13 = arith.constant 0 : index
      %13 = vector.load %arg4[%c0_12, %c0_13] : memref<1x128xf32, #tpu.memory_space<vmem>>, vector<1x128xf32>
      %14 = vector.broadcast %13 : vector<1x128xf32> to vector<128x128xf32>
      %15 = arith.addf %12, %14 : vector<128x128xf32>
      %cst_14 = arith.constant 0.000000e+00 : f32
      %16 = vector.broadcast %cst_14 : f32 to vector<128x128xf32>
      %17 = arith.maximumf %15, %16 : vector<128x128xf32>
      %18 = arith.truncf %17 : vector<128x128xf32> to vector<128x128xbf16>
      %c0_15 = arith.constant 0 : index
      %c0_16 = arith.constant 0 : index
      %19 = vector.load %arg5[%c0_15, %c0_16] : memref<128x128xbf16, #tpu.memory_space<vmem>>, vector<128x128xbf16>
      tpu.vector_store %arg5[%c0_15, %c0_16], %18 {strides = array<i32>} : memref<128x128xbf16, #tpu.memory_space<vmem>>, vector<128x128xbf16>,
    } else {
    }
    return
  }
  func.func @transform_0(%arg0: i32, %arg1: i32) -> (i32, i32) {
    %c0_i32 = arith.constant 0 : i32
    return %arg0, %arg1 : i32, i32
  }
  func.func @transform_1(%arg0: i32, %arg1: i32) -> (i32, i32) {
    %c0_i32 = arith.constant 0 : i32
    %c0_i32_0 = arith.constant 0 : i32
    return %arg1, %c0_i32 : i32, i32
  }
  func.func @transform_2(%arg0: i32, %arg1: i32) -> (i32, i32) {
    %c0_i32 = arith.constant 0 : i32
    %c0_i32_0 = arith.constant 0 : i32
    %c0_i32_1 = arith.constant 0 : i32
    return %c0_i32, %c0_i32_0 : i32, i32
  }
  func.func @transform_3(%arg0: i32, %arg1: i32) -> (i32, i32) {
    %c0_i32 = arith.constant 0 : i32
    %c0_i32_0 = arith.constant 0 : i32
    return %arg0, %c0_i32 : i32, i32
  }
}

module attributes {stable_mosaic.version = 11 : i64} {
  func.func @_aggregate_fc_kernel(%arg0: i32, %arg1: i32, %arg2: memref<128x256xbf16, #tpu.memory_space<vmem>>, %arg3: memref<256x128xbf16, #tpu.memory_space<vmem>>, %arg4: memref<1x128xf32, #tpu.memory_space<vmem>>, %arg5: memref<128x128xbf16, #tpu.memory_space<vmem>>, %arg6: memref<1x128xf32, #tpu.memory_space<vmem>>, %arg7: memref<128x128xf32, #tpu.memory_space<vmem>>, %arg8: memref<128x128xf32, #tpu.memory_space<vmem>>) attributes {dimension_semantics = [#tpu.dimension_semantics<parallel>, #tpu.dimension_semantics<arbitrary>], iteration_bounds = array<i64: 2, 1>, scalar_prefetch = 0 : i64, scratch_operands = 1 : i64, tpu.core_type = #tpu.core_type<tc>, window_params = [{transform_indices = @transform_0, window_bounds = array<i64: 128, 256>}, {transform_indices = @transform_1, window_bounds = array<i64: 256, 128>}, {pipeline_mode = #tpu.pipeline_mode<synchronous>, transform_indices = @transform_2, window_bounds = array<i64: 1, 128>}, {pipeline_mode = #tpu.pipeline_mode<synchronous>, transform_indices = @transform_3, window_bounds = array<i64: 128, 128>}, {pipeline_mode = #tpu.pipeline_mode<synchronous>, transform_indices = @transform_4, window_bounds = array<i64: 1, 128>}, {transform_indices = @transform_5, window_bounds = array<i64: 128, 128>}]} {
    %c0_i32 = arith.constant 0 : i32
    %0 = arith.cmpi eq, %arg1, %c0_i32 : i32
    %1 = arith.extui %0 : i1 to i32
    %c0_i32_0 = arith.constant 0 : i32
    %2 = arith.cmpi ne, %1, %c0_i32_0 : i32
    scf.if %2 {
      %cst_10 = arith.constant 0.000000e+00 : f32
      %12 = vector.broadcast %cst_10 : f32 to vector<128x128xf32>
      %c0_11 = arith.constant 0 : index
      %c0_12 = arith.constant 0 : index
      %13 = vector.load %arg8[%c0_11, %c0_12] : memref<128x128xf32, #tpu.memory_space<vmem>>, vector<128x128xf32>
      tpu.vector_store %arg8[%c0_11, %c0_12], %12 {strides = array<i32>} : memref<128x128xf32, #tpu.memory_space<vmem>>, vector<128x128xf32>,
    } else {
    }
    %c0 = arith.constant 0 : index
    %c0_1 = arith.constant 0 : index
    %3 = vector.load %arg8[%c0, %c0_1] : memref<128x128xf32, #tpu.memory_space<vmem>>, vector<128x128xf32>
    %c0_2 = arith.constant 0 : index
    %c0_3 = arith.constant 0 : index
    %4 = vector.load %arg2[%c0_2, %c0_3] : memref<128x256xbf16, #tpu.memory_space<vmem>>, vector<128x256xbf16>
    %c0_4 = arith.constant 0 : index
    %c0_5 = arith.constant 0 : index
    %5 = vector.load %arg3[%c0_4, %c0_5] : memref<256x128xbf16, #tpu.memory_space<vmem>>, vector<256x128xbf16>
    %cst = arith.constant dense<0.000000e+00> : vector<128x128xf32>
    %6 = tpu.matmul %4, %5, %cst {dimension_numbers = #tpu.dot_dimension_numbers<[1], [0], [0], [1], [0, 0, 1, 1], [], []>} : vector<128x256xbf16>, vector<256x128xbf16>, vector<128x128xf32> -> vector<128x128xf32>
    %7 = arith.addf %3, %6 : vector<128x128xf32>
    %c0_6 = arith.constant 0 : index
    %c0_7 = arith.constant 0 : index
    %8 = vector.load %arg8[%c0_6, %c0_7] : memref<128x128xf32, #tpu.memory_space<vmem>>, vector<128x128xf32>
    tpu.vector_store %arg8[%c0_6, %c0_7], %7 {strides = array<i32>} : memref<128x128xf32, #tpu.memory_space<vmem>>, vector<128x128xf32>,
    %c0_i32_8 = arith.constant 0 : i32
    %9 = arith.cmpi eq, %arg1, %c0_i32_8 : i32
    %10 = arith.extui %9 : i1 to i32
    %c0_i32_9 = arith.constant 0 : i32
    %11 = arith.cmpi ne, %10, %c0_i32_9 : i32
    scf.if %11 {
      %c0_10 = arith.constant 0 : index
      %c0_11 = arith.constant 0 : index
      %12 = vector.load %arg8[%c0_10, %c0_11] : memref<128x128xf32, #tpu.memory_space<vmem>>, vector<128x128xf32>
      %c0_12 = arith.constant 0 : index
      %c0_13 = arith.constant 0 : index
      %13 = vector.load %arg4[%c0_12, %c0_13] : memref<1x128xf32, #tpu.memory_space<vmem>>, vector<1x128xf32>
      %14 = vector.broadcast %13 : vector<1x128xf32> to vector<128x128xf32>
      %15 = arith.addf %12, %14 : vector<128x128xf32>
      %cst_14 = arith.constant 0.000000e+00 : f32
      %16 = vector.broadcast %cst_14 : f32 to vector<128x128xf32>
      %17 = arith.maximumf %15, %16 : vector<128x128xf32>
      %18 = arith.truncf %17 : vector<128x128xf32> to vector<128x128xbf16>
      %c0_15 = arith.constant 0 : index
      %c0_16 = arith.constant 0 : index
      %19 = vector.load %arg5[%c0_15, %c0_16] : memref<128x128xbf16, #tpu.memory_space<vmem>>, vector<128x128xbf16>
      %cst_17 = arith.constant dense<0.000000e+00> : vector<128x128xf32>
      %20 = tpu.matmul %18, %19, %cst_17 {dimension_numbers = #tpu.dot_dimension_numbers<[1], [0], [0], [1], [0, 0, 1, 1], [], []>} : vector<128x128xbf16>, vector<128x128xbf16>, vector<128x128xf32> -> vector<128x128xf32>
      %c0_18 = arith.constant 0 : index
      %c0_19 = arith.constant 0 : index
      %21 = vector.load %arg6[%c0_18, %c0_19] : memref<1x128xf32, #tpu.memory_space<vmem>>, vector<1x128xf32>
      %22 = vector.broadcast %21 : vector<1x128xf32> to vector<128x128xf32>
      %23 = arith.addf %20, %22 : vector<128x128xf32>
      %c0_20 = arith.constant 0 : index
      %c0_21 = arith.constant 0 : index
      %24 = vector.load %arg7[%c0_20, %c0_21] : memref<128x128xf32, #tpu.memory_space<vmem>>, vector<128x128xf32>
      tpu.vector_store %arg7[%c0_20, %c0_21], %23 {strides = array<i32>} : memref<128x128xf32, #tpu.memory_space<vmem>>, vector<128x128xf32>,
    } else {
    }
    return
  }
  func.func @transform_0(%arg0: i32, %arg1: i32) -> (i32, i32) {
    %c0_i32 = arith.constant 0 : i32
    return %arg0, %arg1 : i32, i32
  }
  func.func @transform_1(%arg0: i32, %arg1: i32) -> (i32, i32) {
    %c0_i32 = arith.constant 0 : i32
    %c0_i32_0 = arith.constant 0 : i32
    return %arg1, %c0_i32 : i32, i32
  }
  func.func @transform_2(%arg0: i32, %arg1: i32) -> (i32, i32) {
    %c0_i32 = arith.constant 0 : i32
    %c0_i32_0 = arith.constant 0 : i32
    %c0_i32_1 = arith.constant 0 : i32
    return %c0_i32, %c0_i32_0 : i32, i32
  }
  func.func @transform_3(%arg0: i32, %arg1: i32) -> (i32, i32) {
    %c0_i32 = arith.constant 0 : i32
    %c0_i32_0 = arith.constant 0 : i32
    %c0_i32_1 = arith.constant 0 : i32
    return %c0_i32, %c0_i32_0 : i32, i32
  }
  func.func @transform_4(%arg0: i32, %arg1: i32) -> (i32, i32) {
    %c0_i32 = arith.constant 0 : i32
    %c0_i32_0 = arith.constant 0 : i32
    %c0_i32_1 = arith.constant 0 : i32
    return %c0_i32, %c0_i32_0 : i32, i32
  }
  func.func @transform_5(%arg0: i32, %arg1: i32) -> (i32, i32) {
    %c0_i32 = arith.constant 0 : i32
    %c0_i32_0 = arith.constant 0 : i32
    return %arg0, %c0_i32 : i32, i32
  }
}

</mosaic_0001>

<bundles_post_ra>
// kernel: gcn_forward.2
= control target key start
LH: loop header
LB: loop body
LE: loop exit
PB: predicated region body
PF: predicated region fallthrough
CT: control target
= control target key end

     0   :  { %s1155_s12 = smov 0   ;;  %s1157_s13 = smov 0   ;;  %s1289_s0 = inlined_call_operand.vmem [shape: bf16[256,256], index: 0, kind: input, shape index: {}]   ;;  %s1290_s1 = inlined_call_operand.vmem [shape: bf16[256,128], index: 1, kind: input, shape index: {}]   ;;  %s1291_s2 = inlined_call_operand.vmem [shape: f32[1,128], index: 2, kind: input, shape index: {}]   ;;  %s1292_s3 = inlined_call_operand.vmem [shape: bf16[256,128], index: 3, kind: output, shape index: {}]  }
   0x1   :  { %s1159_s14 = smov 0  }
   0x2 LB: > { %s25_s15 = sadd.s32 1, %s1129_s13  ;;  %p846_p0 = scmp.ge.s32.totalorder %s1133_s14, 1  ;;  %s1133_s14 = sphi %s1159_s14, %s13_s14   ;;  %s1129_s13 = sphi %s1157_s13, %s1294_s13   ;;  %s1125_s12 = sphi %s1155_s12, %s1293_s12  }
   0x3   : > { %p27_p1 = scmp.ge.s32.totalorder %s25_s15, 2  ;;  %p169_p2 = scmp.lt.s32.totalorder %s1133_s14, 3 }
   0x5   : > { %s1296_s15 = smov (%p27_p1, %s25_s15), 0  ;;  %p170_p3 = pnand %p846_p0, %p169_p2 }
   0x6   : > { %s847_s18 = sshll.u32 (!%p170_p3), %s1125_s12, 4 }
   0x7   : > { %173 = sbr.rel (%p170_p3) target bundleno = 277 (0x115), region = 32  ;;  %p205_p4 = scmp.lt.s32.totalorder (!%p170_p3), %s847_s18, 31 }
   0xc   : > { %v1071_v0 = vld [vmem:[%s1290_s1 + $0x78] sm:$0xff]   ;;  %v1073_v2 = vld [vmem:[%s1290_s1 + $0x70] sm:$0xff]   ;;  %v1075_v4 = vld [vmem:[%s1290_s1 + $0x68] sm:$0xff]   ;;  %s1298_s18 = smov (!%p205_p4, %s847_s18), 31 }
   0xd   : > { %v1072_v1 = vld [vmem:[%s1290_s1 + $0x38] sm:$0xff]   ;;  %967 = vmatprep.subr.bf16.mxu0 %v1071_v0  ;;  %1031 = vmatprep.subr.bf16.mxu1 %v1071_v0  ;;  %v1074_v3 = vld [vmem:[%s1290_s1 + $0x30] sm:$0xff]   ;;  %v1076_v5 = vld [vmem:[%s1290_s1 + $0x28] sm:$0xff]   ;;  %s903_s6 = sshll.u32 %s1298_s18, 3  ;;  %s851_s5 = sshll.u32 %s1298_s18, 2 }
   0xe   : > { %968 = vmatpush3.bf16.msra.mxu0 %v1072_v1  ;;  %1039 = vmatpush3.bf16.msra.mxu1 %v1072_v1  ;;  %v1077_v6 = vld [vmem:[%s1290_s1 + $0x60] sm:$0xff]   ;;  %v1079_v8 = vld [vmem:[%s1290_s1 + $0x58] sm:$0xff]   ;;  %s1206_s11 = scalar_lea.vmem %s1289_s0, %s903_s6  ;;  %v1081_v10 = vld [vmem:[%s1290_s1 + $0x50] sm:$0xff]   ;;  %s1258_s8 = scalar_lea.vmem %s1292_s3, %s851_s5 }
   0xf   : > { %969 = vmatprep.subr.bf16.mxu0 %v1073_v2  ;;  %1032 = vmatprep.subr.bf16.mxu1 %v1073_v2  ;;  %v1078_v7 = vld [vmem:[%s1290_s1 + $0x20] sm:$0xff]   ;;  %v1080_v9 = vld [vmem:[%s1290_s1 + $0x18] sm:$0xff]   ;;  %v1082_v13 = vld [vmem:[%s1290_s1 + $0x10] sm:$0xff]  }
  0x10   : > { %v1089_v11 = vld [vmem:[%s1206_s11 + $0x4] ss:$8 sps:$4 sm:$0xff]   ;;  %v1087_v18 = vld [vmem:[%s1206_s11] ss:$8 sps:$4 sm:$0xff]   ;;  %v1093_v20 = vld [vmem:[%s1206_s11 + $0x14] ss:$8 sps:$4 sm:$0xff]  }
  0x11   : > { %v1092_v12 = vld [vmem:[%s1206_s11 + $0x44] ss:$8 sps:$4 sm:$0xff]   ;;  %520 = vmatprep.mubr.bf16.mxu0 %v1089_v11  ;;  %v1090_v19 = vld [vmem:[%s1206_s11 + $0x40] ss:$8 sps:$4 sm:$0xff]   ;;  %v1095_v21 = vld [vmem:[%s1206_s11 + $0x54] ss:$8 sps:$4 sm:$0xff]  }
  0x12   : > { %970 = vmatpush3.bf16.msra.mxu0 %v1074_v3  ;;  %1040 = vmatpush3.bf16.msra.mxu1 %v1074_v3  ;;  %v1083_v14 = vld [vmem:[%s1290_s1 + $0x48] sm:$0xff]   ;;  %v1085_v16 = vld [vmem:[%s1290_s1 + $0x40] sm:$0xff]   ;;  %v1097_v22 = vld [vmem:[%s1206_s11 + $0x10] ss:$8 sps:$4 sm:$0xff]  }
  0x13   : > { %971 = vmatprep.subr.bf16.mxu0 %v1075_v4  ;;  %1033 = vmatprep.subr.bf16.mxu1 %v1075_v4  ;;  %v1084_v15 = vld [vmem:[%s1290_s1 + $0x8] sm:$0xff]   ;;  %v1086_v17 = vld [vmem:[%s1290_s1] sm:$0xff]   ;;  %v1098_v23 = vld [vmem:[%s1206_s11 + $0x50] ss:$8 sps:$4 sm:$0xff]  }
  0x14   : > { %552 = vmatprep.mubr.bf16.mxu1 %v1092_v12  ;;  %v1099_v24 = vld [vmem:[%s1206_s11 + $0x24] ss:$8 sps:$4 sm:$0xff]   ;;  %v1103_v26 = vld [vmem:[%s1206_s11 + $0x20] ss:$8 sps:$4 sm:$0xff]   ;;  %v1105_v28 = vld [vmem:[%s1206_s11 + $0x34] ss:$8 sps:$4 sm:$0xff]  }
  0x15   : > { %v1101_v25 = vld [vmem:[%s1206_s11 + $0x64] ss:$8 sps:$4 sm:$0xff]   ;;  %v1104_v27 = vld [vmem:[%s1206_s11 + $0x60] ss:$8 sps:$4 sm:$0xff]   ;;  %v1107_v29 = vld [vmem:[%s1206_s11 + $0x74] ss:$8 sps:$4 sm:$0xff]  }
  0x16   : > { %972 = vmatpush3.bf16.msra.mxu0 %v1076_v5  ;;  %1041 = vmatpush3.bf16.msra.mxu1 %v1076_v5  ;;  %v1109_v30 = vld [vmem:[%s1206_s11 + $0x30] ss:$8 sps:$4 sm:$0xff]   ;;  %v1248_v37 = vld [vmem:[%s1291_s2] ss:$0 sm:$0xff] }
  0x17   : > { %973 = vmatprep.subr.bf16.mxu0 %v1077_v6  ;;  %1034 = vmatprep.subr.bf16.mxu1 %v1077_v6  ;;  %v1110_v31 = vld [vmem:[%s1206_s11 + $0x70] ss:$8 sps:$4 sm:$0xff]  }
  0x1a   : > { %974 = vmatpush3.bf16.msra.mxu0 %v1078_v7  ;;  %1042 = vmatpush3.bf16.msra.mxu1 %v1078_v7 }
  0x1b   : > { %975 = vmatprep.subr.bf16.mxu0 %v1079_v8  ;;  %1035 = vmatprep.subr.bf16.mxu1 %v1079_v8 }
  0x1e   : > { %976 = vmatpush3.bf16.msra.mxu0 %v1080_v9  ;;  %1043 = vmatpush3.bf16.msra.mxu1 %v1080_v9 }
  0x1f   : > { %977 = vmatprep.subr.bf16.mxu0 %v1081_v10  ;;  %1036 = vmatprep.subr.bf16.mxu1 %v1081_v10 }
  0x22   : > { %978 = vmatpush3.bf16.msra.mxu0 %v1082_v13  ;;  %1044 = vmatpush3.bf16.msra.mxu1 %v1082_v13 }
  0x23   : > { %979 = vmatprep.subr.bf16.mxu0 %v1083_v14  ;;  %1037 = vmatprep.subr.bf16.mxu1 %v1083_v14 }
  0x26   : > { %980 = vmatpush3.bf16.msra.mxu0 %v1084_v15  ;;  %1045 = vmatpush3.bf16.msra.mxu1 %v1084_v15 }
  0x27   : > { %981 = vmatprep.subr.bf16.mxu0 %v1085_v16  ;;  %1038 = vmatprep.subr.bf16.mxu1 %v1085_v16 }
  0x2a   : > { %982 = vmatpush3.bf16.msra.mxu0 %v1086_v17  ;;  %1046 = vmatpush3.bf16.msra.mxu1 %v1086_v17 }
  0x2d   : > { %521 = vmatmul.mubr.bf16.vlgmr.msra.gmra.mxu0 %v1087_v18  ;;  %553 = vmatmul.mubr.bf16.vlgmr.msra.gmra.mxu1 %v1090_v19 }
  0x2e   : > { %528 = vmatprep.mubr.bf16.mxu0 %v1093_v20  ;;  %560 = vmatprep.mubr.bf16.mxu1 %v1095_v21 }
  0x35   : > { %529 = vmatmul.mubr.bf16.gmra.mxu0 %v1097_v22  ;;  %561 = vmatmul.mubr.bf16.gmra.mxu1 %v1098_v23 }
  0x36   : > { %536 = vmatprep.mubr.bf16.mxu0 %v1099_v24  ;;  %568 = vmatprep.mubr.bf16.mxu1 %v1101_v25 }
  0x3d   : > { %537 = vmatmul.mubr.bf16.gmra.mxu0 %v1103_v26  ;;  %569 = vmatmul.mubr.bf16.gmra.mxu1 %v1104_v27 }
  0x3e   : > { %544 = vmatprep.mubr.bf16.mxu0 %v1105_v28  ;;  %576 = vmatprep.mubr.bf16.mxu1 %v1107_v29 }
  0x45   : > { %545 = vmatmul.mubr.bf16.gmra.mxu0 %v1109_v30  ;;  %577 = vmatmul.mubr.bf16.gmra.mxu1 %v1110_v31 }
  0xed   : > { %v983_v32 = vpop.f32.mrf.mxu0  ;;  %v1007_v33 = vpop.f32.mrf.mxu1 }
  0xef   : > { %v984_v34 = vpop.f32.mrf.mxu0  ;;  %v1008_v35 = vpop.f32.mrf.mxu1 }
  0xf0   : > { %v985_v36 = vadd.f32 %v984_v34, %v983_v32  ;;  %v1009_v38 = vadd.f32 %v1008_v35, %v1007_v33 }
  0xf1   : > { %v986_v39 = vpop.f32.mrf.mxu0  ;;  %v1010_v40 = vpop.f32.mrf.mxu1 }
  0xf2   : > { %v643_v41 = vadd.f32 %v985_v36, %v1248_v37  ;;  %v651_v42 = vadd.f32 %v1009_v38, %v1248_v37 }
  0xf3   : > { %v987_v43 = vpop.f32.mrf.mxu0  ;;  %v1011_v44 = vpop.f32.mrf.mxu1 }
  0xf4   : > { %v988_v45 = vadd.f32 %v987_v43, %v986_v39  ;;  %v1012_v46 = vadd.f32 %v1011_v44, %v1010_v40  ;;  %v659_v51 = vmax.f32 %v643_v41, 0.0  ;;  %v667_v52 = vmax.f32 %v651_v42, 0.0 }
  0xf5   : > { %v989_v47 = vpop.f32.mrf.mxu0  ;;  %v1013_v48 = vpop.f32.mrf.mxu1 }
  0xf6   : > { %v644_v49 = vadd.f32 %v988_v45, %v1248_v37  ;;  %v652_v50 = vadd.f32 %v1012_v46, %v1248_v37 }
  0xf7   : > { %v990_v53 = vpop.f32.mrf.mxu0  ;;  %v1014_v54 = vpop.f32.mrf.mxu1 }
  0xf8   : > { %v660_v55 = vmax.f32 %v644_v49, 0.0  ;;  %v668_v56 = vmax.f32 %v652_v50, 0.0  ;;  %v991_v57 = vadd.f32 %v990_v53, %v989_v47  ;;  %v1015_v58 = vadd.f32 %v1014_v54, %v1013_v48 }
  0xf9   : > { %v992_v59 = vpop.f32.mrf.mxu0  ;;  %v1016_v60 = vpop.f32.mrf.mxu1 }
  0xfa   : > { %v923_v61 = vpack.c.bf16 %v660_v55, %v659_v51  ;;  %v943_v62 = vpack.c.bf16 %v668_v56, %v667_v52  ;;  %v645_v63 = vadd.f32 %v991_v57, %v1248_v37  ;;  %v653_v0 = vadd.f32 %v1015_v58, %v1248_v37 }
  0xfb   : > { %v993_v1 = vpop.f32.mrf.mxu0  ;;  %v1017_v2 = vpop.f32.mrf.mxu1 }
  0xfc   : > { %924 = vst [vmem:[%s1258_s8] sm:$0xff] %v923_v61   ;;  %963 = vst [vmem:[%s1258_s8 + $0x20] sm:$0xff] %v943_v62   ;;  %v994_v3 = vadd.f32 %v993_v1, %v992_v59  ;;  %v1018_v4 = vadd.f32 %v1017_v2, %v1016_v60  ;;  %v661_v9 = vmax.f32 %v645_v63, 0.0  ;;  %v669_v10 = vmax.f32 %v653_v0, 0.0 }
  0xfd   : > { %v995_v5 = vpop.f32.mrf.mxu0  ;;  %v1019_v6 = vpop.f32.mrf.mxu1 }
  0xfe   : > { %v646_v7 = vadd.f32 %v994_v3, %v1248_v37  ;;  %v654_v8 = vadd.f32 %v1018_v4, %v1248_v37 }
  0xff   : > { %v996_v11 = vpop.f32.mrf.mxu0  ;;  %v1020_v12 = vpop.f32.mrf.mxu1 }
 0x100   : > { %v662_v13 = vmax.f32 %v646_v7, 0.0  ;;  %v670_v14 = vmax.f32 %v654_v8, 0.0  ;;  %v997_v15 = vadd.f32 %v996_v11, %v995_v5  ;;  %v1021_v16 = vadd.f32 %v1020_v12, %v1019_v6 }
 0x101   : > { %v998_v17 = vpop.f32.mrf.mxu0  ;;  %v1022_v18 = vpop.f32.mrf.mxu1 }
 0x102   : > { %v928_v19 = vpack.c.bf16 %v662_v13, %v661_v9  ;;  %v948_v20 = vpack.c.bf16 %v670_v14, %v669_v10  ;;  %v647_v21 = vadd.f32 %v997_v15, %v1248_v37  ;;  %v655_v22 = vadd.f32 %v1021_v16, %v1248_v37 }
 0x103   : > { %v999_v23 = vpop.f32.mrf.mxu0  ;;  %v1023_v24 = vpop.f32.mrf.mxu1 }
 0x104   : > { %960 = vst [vmem:[%s1258_s8 + $0x8] sm:$0xff] %v928_v19   ;;  %964 = vst [vmem:[%s1258_s8 + $0x28] sm:$0xff] %v948_v20   ;;  %v1000_v25 = vadd.f32 %v999_v23, %v998_v17  ;;  %v1024_v26 = vadd.f32 %v1023_v24, %v1022_v18  ;;  %v663_v31 = vmax.f32 %v647_v21, 0.0  ;;  %v671_v32 = vmax.f32 %v655_v22, 0.0 }
 0x105   : > { %v1001_v27 = vpop.f32.mrf.mxu0  ;;  %v1025_v28 = vpop.f32.mrf.mxu1 }
 0x106   : > { %v648_v29 = vadd.f32 %v1000_v25, %v1248_v37  ;;  %v656_v30 = vadd.f32 %v1024_v26, %v1248_v37 }
 0x107   : > { %v1002_v33 = vpop.f32.mrf.mxu0  ;;  %v1026_v34 = vpop.f32.mrf.mxu1 }
 0x108   : > { %v664_v35 = vmax.f32 %v648_v29, 0.0  ;;  %v672_v36 = vmax.f32 %v656_v30, 0.0  ;;  %v1003_v38 = vadd.f32 %v1002_v33, %v1001_v27  ;;  %v1027_v39 = vadd.f32 %v1026_v34, %v1025_v28 }
 0x109   : > { %v1004_v40 = vpop.f32.mrf.mxu0  ;;  %v1028_v41 = vpop.f32.mrf.mxu1 }
 0x10a   : > { %v933_v42 = vpack.c.bf16 %v664_v35, %v663_v31  ;;  %v953_v43 = vpack.c.bf16 %v672_v36, %v671_v32  ;;  %v649_v46 = vadd.f32 %v1003_v38, %v1248_v37  ;;  %v657_v47 = vadd.f32 %v1027_v39, %v1248_v37 }
 0x10b   : > { %v1005_v44 = vpop.f32.mrf.mxu0  ;;  %v1029_v45 = vpop.f32.mrf.mxu1 }
 0x10c   : > { %961 = vst [vmem:[%s1258_s8 + $0x10] sm:$0xff] %v933_v42   ;;  %965 = vst [vmem:[%s1258_s8 + $0x30] sm:$0xff] %v953_v43   ;;  %v1006_v48 = vadd.f32 %v1005_v44, %v1004_v40  ;;  %v1030_v49 = vadd.f32 %v1029_v45, %v1028_v41  ;;  %v665_v52 = vmax.f32 %v649_v46, 0.0  ;;  %v673_v53 = vmax.f32 %v657_v47, 0.0 }
 0x10e   : > { %v650_v50 = vadd.f32 %v1006_v48, %v1248_v37  ;;  %v658_v51 = vadd.f32 %v1030_v49, %v1248_v37 }
 0x110   : > { %v666_v54 = vmax.f32 %v650_v50, 0.0  ;;  %v674_v55 = vmax.f32 %v658_v51, 0.0 }
 0x112   : > { %v938_v56 = vpack.c.bf16 %v666_v54, %v665_v52  ;;  %v958_v57 = vpack.c.bf16 %v674_v55, %v673_v53 }
 0x114   : > { %962 = vst [vmem:[%s1258_s8 + $0x18] sm:$0xff] %v938_v56   ;;  %966 = vst [vmem:[%s1258_s8 + $0x38] sm:$0xff] %v958_v57  }
 0x115 PF: > { %s13_s14 = sadd.s32 1, %s1133_s14   ;;  %s1293_s12 = smov %s1129_s13 }
 0x116   : > { %p10_p5 = scmp.ge.s32.totalorder %s13_s14, 4   ;;  %s1294_s13 = smov %s1296_s15 }
 0x118   :  { %12 = sbr.rel (!%p10_p5) target bundleno = 2 (0x2), region = 73 }

// kernel: gcn_forward.3
= control target key start
LH: loop header
LB: loop body
LE: loop exit
PB: predicated region body
PF: predicated region fallthrough
CT: control target
= control target key end

     0   :  { %s1301_s18 = smov 0   ;;  %s1303_s19 = smov 0   ;;  %s1473_s0 = inlined_call_operand.vmem [shape: bf16[256,256], index: 0, kind: input, shape index: {}]   ;;  %s1474_s1 = inlined_call_operand.vmem [shape: bf16[256,128], index: 1, kind: input, shape index: {}]   ;;  %s1475_s2 = inlined_call_operand.vmem [shape: f32[1,128], index: 2, kind: input, shape index: {}]   ;;  %s1476_s3 = inlined_call_operand.vmem [shape: bf16[128,128], index: 3, kind: input, shape index: {}]   ;;  %s1477_s4 = inlined_call_operand.vmem [shape: f32[1,128], index: 4, kind: input, shape index: {}]   ;;  %s1478_s5 = inlined_call_operand.vmem [shape: f32[256,128], index: 5, kind: output, shape index: {}]  }
   0x1   :  { %s1305_s20 = smov 0  }
   0x2 LB: > { %s27_s21 = sadd.s32 1, %s1265_s19  ;;  %p1012_p0 = scmp.ge.s32.totalorder %s1269_s20, 1  ;;  %s1269_s20 = sphi %s1305_s20, %s15_s20   ;;  %s1265_s19 = sphi %s1303_s19, %s1480_s19   ;;  %s1261_s18 = sphi %s1301_s18, %s1479_s18  }
   0x3   : > { %p29_p1 = scmp.ge.s32.totalorder %s27_s21, 2  ;;  %p219_p2 = scmp.lt.s32.totalorder %s1269_s20, 3 }
   0x5   : > { %s1482_s21 = smov (%p29_p1, %s27_s21), 0  ;;  %p220_p3 = pnand %p1012_p0, %p219_p2 }
   0x6   : > { %s1013_s24 = sshll.u32 (!%p220_p3), %s1261_s18, 4 }
   0x7   : > { %223 = sbr.rel (%p220_p3) target bundleno = 510 (0x1fe), region = 40  ;;  %p259_p4 = scmp.lt.s32.totalorder (!%p220_p3), %s1013_s24, 31 }
   0xc   : > { %v1199_v0 = vld [vmem:[%s1474_s1 + $0x78] sm:$0xff]   ;;  %v1201_v2 = vld [vmem:[%s1474_s1 + $0x70] sm:$0xff]   ;;  %v1203_v4 = vld [vmem:[%s1474_s1 + $0x68] sm:$0xff]   ;;  %s1484_s24 = smov (!%p259_p4, %s1013_s24), 31 }
   0xd   : > { %v1200_v1 = vld [vmem:[%s1474_s1 + $0x38] sm:$0xff]   ;;  %1063 = vmatprep.subr.bf16.mxu0 %v1199_v0  ;;  %v1202_v3 = vld [vmem:[%s1474_s1 + $0x30] sm:$0xff]   ;;  %v1204_v5 = vld [vmem:[%s1474_s1 + $0x28] sm:$0xff]   ;;  %s1062_s14 = sshll.u32 %s1484_s24, 3 }
   0xe   : > { %1064 = vmatpush3.bf16.msra.mxu0 %v1200_v1  ;;  %v1205_v6 = vld [vmem:[%s1474_s1 + $0x60] sm:$0xff]   ;;  %v1207_v8 = vld [vmem:[%s1474_s1 + $0x58] sm:$0xff]   ;;  %s1354_s22 = scalar_lea.vmem %s1473_s0, %s1062_s14  ;;  %v1209_v10 = vld [vmem:[%s1474_s1 + $0x50] sm:$0xff]   ;;  %s1446_s16 = scalar_lea.vmem %s1478_s5, %s1062_s14 }
   0xf   : > { %1065 = vmatprep.subr.bf16.mxu0 %v1201_v2  ;;  %v1206_v7 = vld [vmem:[%s1474_s1 + $0x20] sm:$0xff]   ;;  %v1208_v9 = vld [vmem:[%s1474_s1 + $0x18] sm:$0xff]   ;;  %v1210_v12 = vld [vmem:[%s1474_s1 + $0x10] sm:$0xff]  }
  0x10   : > { %v1217_v11 = vld [vmem:[%s1354_s22 + $0x4] ss:$8 sps:$4 sm:$0xff]   ;;  %v1239_v17 = vld [vmem:[%s1476_s3 + $0x38] sm:$0xff]   ;;  %v1215_v18 = vld [vmem:[%s1354_s22] ss:$8 sps:$4 sm:$0xff]  }
  0x11   : > { %574 = vmatprep.mubr.bf16.mxu0 %v1217_v11  ;;  %v1211_v13 = vld [vmem:[%s1474_s1 + $0x48] sm:$0xff]   ;;  %v1213_v15 = vld [vmem:[%s1474_s1 + $0x40] sm:$0xff]   ;;  %v1240_v19 = vld [vmem:[%s1476_s3 + $0x30] sm:$0xff]   ;;  %1143 = vmatprep.subr.bf16.mxu1 %v1239_v17 }
  0x12   : > { %1066 = vmatpush3.bf16.msra.mxu0 %v1202_v3  ;;  %v1212_v14 = vld [vmem:[%s1474_s1 + $0x8] sm:$0xff]   ;;  %v1214_v16 = vld [vmem:[%s1474_s1] sm:$0xff]   ;;  %v1218_v20 = vld [vmem:[%s1354_s22 + $0x14] ss:$8 sps:$4 sm:$0xff]   ;;  %1144 = vmatpush3.bf16.msra.mxu1 %v1239_v17 }
  0x13   : > { %1067 = vmatprep.subr.bf16.mxu0 %v1203_v4  ;;  %v1241_v21 = vld [vmem:[%s1476_s3 + $0x28] sm:$0xff]   ;;  %1145 = vmatprep.subr.bf16.mxu1 %v1240_v19  ;;  %v1220_v22 = vld [vmem:[%s1354_s22 + $0x10] ss:$8 sps:$4 sm:$0xff]   ;;  %v1224_v25 = vld [vmem:[%s1354_s22 + $0x34] ss:$8 sps:$4 sm:$0xff]  }
  0x14   : > { %v1221_v23 = vld [vmem:[%s1354_s22 + $0x24] ss:$8 sps:$4 sm:$0xff]   ;;  %v1223_v24 = vld [vmem:[%s1354_s22 + $0x20] ss:$8 sps:$4 sm:$0xff]   ;;  %v1226_v26 = vld [vmem:[%s1354_s22 + $0x30] ss:$8 sps:$4 sm:$0xff]  }
  0x15   : > { %v1227_v27 = vld [vmem:[%s1354_s22 + $0x44] ss:$8 sps:$4 sm:$0xff]   ;;  %v1229_v28 = vld [vmem:[%s1354_s22 + $0x40] ss:$8 sps:$4 sm:$0xff]   ;;  %v1230_v29 = vld [vmem:[%s1354_s22 + $0x54] ss:$8 sps:$4 sm:$0xff]  }
  0x16   : > { %1068 = vmatpush3.bf16.msra.mxu0 %v1204_v5  ;;  %1146 = vmatpush3.bf16.msra.mxu1 %v1240_v19  ;;  %v1232_v30 = vld [vmem:[%s1354_s22 + $0x50] ss:$8 sps:$4 sm:$0xff]   ;;  %v1233_v31 = vld [vmem:[%s1354_s22 + $0x64] ss:$8 sps:$4 sm:$0xff]   ;;  %v1235_v32 = vld [vmem:[%s1354_s22 + $0x60] ss:$8 sps:$4 sm:$0xff]  }
  0x17   : > { %1069 = vmatprep.subr.bf16.mxu0 %v1205_v6  ;;  %1147 = vmatprep.subr.bf16.mxu1 %v1241_v21  ;;  %v1236_v33 = vld [vmem:[%s1354_s22 + $0x74] ss:$8 sps:$4 sm:$0xff]   ;;  %v1238_v34 = vld [vmem:[%s1354_s22 + $0x70] ss:$8 sps:$4 sm:$0xff]   ;;  %v1242_v35 = vld [vmem:[%s1476_s3 + $0x20] sm:$0xff]  }
  0x18   : > { %v1243_v36 = vld [vmem:[%s1476_s3 + $0x18] sm:$0xff]   ;;  %v1244_v37 = vld [vmem:[%s1476_s3 + $0x10] sm:$0xff]   ;;  %v1245_v38 = vld [vmem:[%s1476_s3 + $0x8] sm:$0xff]  }
  0x19   : > { %v1246_v39 = vld [vmem:[%s1476_s3] sm:$0xff]  }
  0x1a   : > { %1070 = vmatpush3.bf16.msra.mxu0 %v1206_v7  ;;  %1148 = vmatpush3.bf16.msra.mxu1 %v1241_v21  ;;  %v1420_v44 = vld [vmem:[%s1475_s2] ss:$0 sm:$0xff] }
  0x1b   : > { %1071 = vmatprep.subr.bf16.mxu0 %v1207_v8  ;;  %1149 = vmatprep.subr.bf16.mxu1 %v1242_v35 }
  0x1e   : > { %1072 = vmatpush3.bf16.msra.mxu0 %v1208_v9  ;;  %1150 = vmatpush3.bf16.msra.mxu1 %v1242_v35 }
  0x1f   : > { %1073 = vmatprep.subr.bf16.mxu0 %v1209_v10  ;;  %1151 = vmatprep.subr.bf16.mxu1 %v1243_v36 }
  0x22   : > { %1074 = vmatpush3.bf16.msra.mxu0 %v1210_v12  ;;  %1152 = vmatpush3.bf16.msra.mxu1 %v1243_v36 }
  0x23   : > { %1075 = vmatprep.subr.bf16.mxu0 %v1211_v13  ;;  %1153 = vmatprep.subr.bf16.mxu1 %v1244_v37 }
  0x26   : > { %1076 = vmatpush3.bf16.msra.mxu0 %v1212_v14  ;;  %1154 = vmatpush3.bf16.msra.mxu1 %v1244_v37 }
  0x27   : > { %1077 = vmatprep.subr.bf16.mxu0 %v1213_v15  ;;  %1155 = vmatprep.subr.bf16.mxu1 %v1245_v38 }
  0x2a   : > { %1078 = vmatpush3.bf16.msra.mxu0 %v1214_v16  ;;  %1156 = vmatpush3.bf16.msra.mxu1 %v1245_v38 }
  0x2b   : > { %1157 = vmatprep.subr.bf16.mxu1 %v1246_v39 }
  0x2d   : > { %575 = vmatmul.mubr.bf16.vlgmr.msra.gmra.mxu0 %v1215_v18 }
  0x2e   : > { %582 = vmatprep.mubr.bf16.mxu0 %v1218_v20  ;;  %1158 = vmatpush3.bf16.msra.mxu1 %v1246_v39 }
  0x35   : > { %583 = vmatmul.mubr.bf16.gmra.mxu0 %v1220_v22 }
  0x36   : > { %590 = vmatprep.mubr.bf16.mxu0 %v1221_v23 }
  0x3d   : > { %591 = vmatmul.mubr.bf16.gmra.mxu0 %v1223_v24 }
  0x3e   : > { %598 = vmatprep.mubr.bf16.mxu0 %v1224_v25 }
  0x45   : > { %599 = vmatmul.mubr.bf16.gmra.mxu0 %v1226_v26 }
  0x46   : > { %606 = vmatprep.mubr.bf16.mxu0 %v1227_v27 }
  0x4d   : > { %607 = vmatmul.mubr.bf16.gmra.mxu0 %v1229_v28 }
  0x4e   : > { %614 = vmatprep.mubr.bf16.mxu0 %v1230_v29 }
  0x55   : > { %615 = vmatmul.mubr.bf16.gmra.mxu0 %v1232_v30 }
  0x56   : > { %622 = vmatprep.mubr.bf16.mxu0 %v1233_v31 }
  0x5d   : > { %623 = vmatmul.mubr.bf16.gmra.mxu0 %v1235_v32 }
  0x5e   : > { %630 = vmatprep.mubr.bf16.mxu0 %v1236_v33 }
  0x65   : > { %631 = vmatmul.mubr.bf16.gmra.mxu0 %v1238_v34 }
  0xed   : > { %v1079_v40 = vpop.f32.mrf.mxu0 }
  0xef   : > { %v1080_v41 = vpop.f32.mrf.mxu0 }
  0xf0   : > { %v1081_v42 = vadd.f32 %v1080_v41, %v1079_v40 }
  0xf1   : > { %v1082_v43 = vpop.f32.mrf.mxu0 }
  0xf2   : > { %v697_v47 = vadd.f32 %v1081_v42, %v1420_v44 }
  0xf3   : > { %v1083_v45 = vpop.f32.mrf.mxu0 }
  0xf4   : > { %v1084_v46 = vadd.f32 %v1083_v45, %v1082_v43  ;;  %v713_v52 = vmax.f32 %v697_v47, 0.0 }
  0xf5   : > { %v1085_v48 = vpop.f32.mrf.mxu0 }
  0xf6   : > { %v698_v49 = vadd.f32 %v1084_v46, %v1420_v44 }
  0xf7   : > { %v1086_v50 = vpop.f32.mrf.mxu0 }
  0xf8   : > { %v1087_v51 = vadd.f32 %v1086_v50, %v1085_v48  ;;  %v714_v53 = vmax.f32 %v698_v49, 0.0 }
  0xf9   : > { %v1088_v54 = vpop.f32.mrf.mxu0 }
  0xfa   : > { %v729_v55 = vpack.c.bf16 %v714_v53, %v713_v52  ;;  %v699_v57 = vadd.f32 %v1087_v51, %v1420_v44 }
  0xfb   : > { %v1089_v56 = vpop.f32.mrf.mxu0 }
  0xfc   : > { %v1090_v58 = vadd.f32 %v1089_v56, %v1088_v54  ;;  %1159 = vmatprep.mubr.bf16.mxu1 %v729_v55  ;;  %v715_v62 = vmax.f32 %v699_v57, 0.0 }
  0xfd   : > { %v1091_v59 = vpop.f32.mrf.mxu0 }
  0xfe   : > { %v700_v60 = vadd.f32 %v1090_v58, %v1420_v44 }
  0xff   : > { %v1092_v61 = vpop.f32.mrf.mxu0 }
 0x100   : > { %v716_v63 = vmax.f32 %v700_v60, 0.0  ;;  %v1093_v0 = vadd.f32 %v1092_v61, %v1091_v59 }
 0x101   : > { %v1094_v1 = vpop.f32.mrf.mxu0 }
 0x102   : > { %v730_v2 = vpack.c.bf16 %v716_v63, %v715_v62  ;;  %v701_v4 = vadd.f32 %v1093_v0, %v1420_v44 }
 0x103   : > { %v1095_v3 = vpop.f32.mrf.mxu0 }
 0x104   : > { %v1096_v5 = vadd.f32 %v1095_v3, %v1094_v1  ;;  %1160 = vmatmul.mubr.bf16.vlgmr.msra.gmra.mxu1 %v730_v2  ;;  %v717_v9 = vmax.f32 %v701_v4, 0.0  ;;  %v1051_v2 = vld [vmem:[%s1477_s4] ss:$0 sm:$0xff] }
 0x105   : > { %v1097_v6 = vpop.f32.mrf.mxu0 }
 0x106   : > { %v702_v7 = vadd.f32 %v1096_v5, %v1420_v44 }
 0x107   : > { %v1098_v8 = vpop.f32.mrf.mxu0 }
 0x108   : > { %v718_v10 = vmax.f32 %v702_v7, 0.0  ;;  %v1099_v11 = vadd.f32 %v1098_v8, %v1097_v6 }
 0x109   : > { %v1100_v12 = vpop.f32.mrf.mxu0 }
 0x10a   : > { %v731_v13 = vpack.c.bf16 %v718_v10, %v717_v9  ;;  %v703_v15 = vadd.f32 %v1099_v11, %v1420_v44 }
 0x10b   : > { %v1101_v14 = vpop.f32.mrf.mxu0 }
 0x10c   : > { %v1102_v16 = vadd.f32 %v1101_v14, %v1100_v12  ;;  %1163 = vmatprep.mubr.bf16.mxu1 %v731_v13  ;;  %v719_v20 = vmax.f32 %v703_v15, 0.0 }
 0x10d   : > { %v1103_v17 = vpop.f32.mrf.mxu0 }
 0x10e   : > { %v704_v18 = vadd.f32 %v1102_v16, %v1420_v44 }
 0x10f   : > { %v1104_v19 = vpop.f32.mrf.mxu0 }
 0x110   : > { %v720_v21 = vmax.f32 %v704_v18, 0.0  ;;  %v1105_v22 = vadd.f32 %v1104_v19, %v1103_v17 }
 0x111   : > { %v1106_v23 = vpop.f32.mrf.mxu0 }
 0x112   : > { %v732_v24 = vpack.c.bf16 %v720_v21, %v719_v20  ;;  %v705_v26 = vadd.f32 %v1105_v22, %v1420_v44 }
 0x113   : > { %v1107_v25 = vpop.f32.mrf.mxu0 }
 0x114   : > { %v1108_v27 = vadd.f32 %v1107_v25, %v1106_v23  ;;  %1164 = vmatmul.mubr.bf16.gmra.mxu1 %v732_v24  ;;  %v721_v31 = vmax.f32 %v705_v26, 0.0 }
 0x115   : > { %v1109_v28 = vpop.f32.mrf.mxu0 }
 0x116   : > { %v706_v29 = vadd.f32 %v1108_v27, %v1420_v44 }
 0x117   : > { %v1110_v30 = vpop.f32.mrf.mxu0 }
 0x118   : > { %v722_v32 = vmax.f32 %v706_v29, 0.0  ;;  %v1111_v33 = vadd.f32 %v1110_v30, %v1109_v28 }
 0x119   : > { %v1112_v34 = vpop.f32.mrf.mxu0 }
 0x11a   : > { %v733_v35 = vpack.c.bf16 %v722_v32, %v721_v31  ;;  %v707_v37 = vadd.f32 %v1111_v33, %v1420_v44 }
 0x11b   : > { %v1113_v36 = vpop.f32.mrf.mxu0 }
 0x11c   : > { %v1114_v38 = vadd.f32 %v1113_v36, %v1112_v34  ;;  %1167 = vmatprep.mubr.bf16.mxu1 %v733_v35  ;;  %v723_v42 = vmax.f32 %v707_v37, 0.0 }
 0x11d   : > { %v1115_v39 = vpop.f32.mrf.mxu0 }
 0x11e   : > { %v708_v40 = vadd.f32 %v1114_v38, %v1420_v44 }
 0x11f   : > { %v1116_v41 = vpop.f32.mrf.mxu0 }
 0x120   : > { %v724_v43 = vmax.f32 %v708_v40, 0.0  ;;  %v1117_v45 = vadd.f32 %v1116_v41, %v1115_v39 }
 0x121   : > { %v1118_v46 = vpop.f32.mrf.mxu0 }
 0x122   : > { %v734_v47 = vpack.c.bf16 %v724_v43, %v723_v42  ;;  %v709_v49 = vadd.f32 %v1117_v45, %v1420_v44 }
 0x123   : > { %v1119_v48 = vpop.f32.mrf.mxu0 }
 0x124   : > { %v1120_v50 = vadd.f32 %v1119_v48, %v1118_v46  ;;  %1168 = vmatmul.mubr.bf16.gmra.mxu1 %v734_v47  ;;  %v725_v54 = vmax.f32 %v709_v49, 0.0 }
 0x125   : > { %v1121_v51 = vpop.f32.mrf.mxu0 }
 0x126   : > { %v710_v52 = vadd.f32 %v1120_v50, %v1420_v44 }
 0x127   : > { %v1122_v53 = vpop.f32.mrf.mxu0 }
 0x128   : > { %v726_v55 = vmax.f32 %v710_v52, 0.0  ;;  %v1123_v56 = vadd.f32 %v1122_v53, %v1121_v51 }
 0x129   : > { %v1124_v57 = vpop.f32.mrf.mxu0 }
 0x12a   : > { %v735_v58 = vpack.c.bf16 %v726_v55, %v725_v54  ;;  %v711_v60 = vadd.f32 %v1123_v56, %v1420_v44 }
 0x12b   : > { %v1125_v59 = vpop.f32.mrf.mxu0 }
 0x12c   : > { %v1126_v61 = vadd.f32 %v1125_v59, %v1124_v57  ;;  %1171 = vmatprep.mubr.bf16.mxu1 %v735_v58  ;;  %v727_v63 = vmax.f32 %v711_v60, 0.0 }
 0x12e   : > { %v712_v62 = vadd.f32 %v1126_v61, %v1420_v44 }
 0x130   : > { %v728_v0 = vmax.f32 %v712_v62, 0.0 }
 0x132   : > { %v736_v1 = vpack.c.bf16 %v728_v0, %v727_v63 }
 0x134   : > { %1172 = vmatmul.mubr.bf16.gmra.mxu1 %v736_v1 }
 0x1c4   : > { %v1161_v44 = vpop.f32.mrf.mxu1 }
 0x1c5   : > { %v851_v3 = vadd.f32 %v1161_v44, %v1051_v2 }
 0x1c6   : > { %v842_v4 = vpop.f32.mrf.mxu1 }
 0x1c7   : > { %907 = vst [vmem:[%s1446_s16 + $0x10] sm:$0xff] %v851_v3  ;;  %v843_v5 = vadd.f32 %v1051_v2, %v842_v4 }
 0x1c8   : > { %v1162_v6 = vpop.f32.mrf.mxu1 }
 0x1c9   : > { %905 = vst [vmem:[%s1446_s16] sm:$0xff] %v843_v5  ;;  %v854_v7 = vadd.f32 %v1162_v6, %v1051_v2 }
 0x1ca   : > { %v845_v8 = vpop.f32.mrf.mxu1 }
 0x1cb   : > { %908 = vst [vmem:[%s1446_s16 + $0x18] sm:$0xff] %v854_v7  ;;  %v846_v9 = vadd.f32 %v1051_v2, %v845_v8 }
 0x1cd   : > { %906 = vst [vmem:[%s1446_s16 + $0x8] sm:$0xff] %v846_v9 }
 0x1d4   : > { %v1165_v10 = vpop.f32.mrf.mxu1 }
 0x1d5   : > { %v867_v11 = vadd.f32 %v1165_v10, %v1051_v2 }
 0x1d6   : > { %v858_v12 = vpop.f32.mrf.mxu1 }
 0x1d7   : > { %911 = vst [vmem:[%s1446_s16 + $0x30] sm:$0xff] %v867_v11  ;;  %v859_v13 = vadd.f32 %v1051_v2, %v858_v12 }
 0x1d8   : > { %v1166_v14 = vpop.f32.mrf.mxu1 }
 0x1d9   : > { %909 = vst [vmem:[%s1446_s16 + $0x20] sm:$0xff] %v859_v13  ;;  %v870_v15 = vadd.f32 %v1166_v14, %v1051_v2 }
 0x1da   : > { %v861_v16 = vpop.f32.mrf.mxu1 }
 0x1db   : > { %912 = vst [vmem:[%s1446_s16 + $0x38] sm:$0xff] %v870_v15  ;;  %v862_v17 = vadd.f32 %v1051_v2, %v861_v16 }
 0x1dd   : > { %910 = vst [vmem:[%s1446_s16 + $0x28] sm:$0xff] %v862_v17 }
 0x1e4   : > { %v1169_v18 = vpop.f32.mrf.mxu1 }
 0x1e5   : > { %v883_v19 = vadd.f32 %v1169_v18, %v1051_v2 }
 0x1e6   : > { %v874_v20 = vpop.f32.mrf.mxu1 }
 0x1e7   : > { %915 = vst [vmem:[%s1446_s16 + $0x50] sm:$0xff] %v883_v19  ;;  %v875_v21 = vadd.f32 %v1051_v2, %v874_v20 }
 0x1e8   : > { %v1170_v22 = vpop.f32.mrf.mxu1 }
 0x1e9   : > { %913 = vst [vmem:[%s1446_s16 + $0x40] sm:$0xff] %v875_v21  ;;  %v886_v23 = vadd.f32 %v1170_v22, %v1051_v2 }
 0x1ea   : > { %v877_v24 = vpop.f32.mrf.mxu1 }
 0x1eb   : > { %916 = vst [vmem:[%s1446_s16 + $0x58] sm:$0xff] %v886_v23  ;;  %v878_v25 = vadd.f32 %v1051_v2, %v877_v24 }
 0x1ed   : > { %914 = vst [vmem:[%s1446_s16 + $0x48] sm:$0xff] %v878_v25 }
 0x1f4   : > { %v1173_v26 = vpop.f32.mrf.mxu1 }
 0x1f5   : > { %v899_v27 = vadd.f32 %v1173_v26, %v1051_v2 }
 0x1f6   : > { %v890_v28 = vpop.f32.mrf.mxu1 }
 0x1f7   : > { %919 = vst [vmem:[%s1446_s16 + $0x70] sm:$0xff] %v899_v27  ;;  %v891_v29 = vadd.f32 %v1051_v2, %v890_v28 }
 0x1f8   : > { %v1174_v30 = vpop.f32.mrf.mxu1 }
 0x1f9   : > { %917 = vst [vmem:[%s1446_s16 + $0x60] sm:$0xff] %v891_v29  ;;  %v902_v31 = vadd.f32 %v1174_v30, %v1051_v2 }
 0x1fa   : > { %v893_v32 = vpop.f32.mrf.mxu1 }
 0x1fb   : > { %920 = vst [vmem:[%s1446_s16 + $0x78] sm:$0xff] %v902_v31  ;;  %v894_v33 = vadd.f32 %v1051_v2, %v893_v32 }
 0x1fd   : > { %918 = vst [vmem:[%s1446_s16 + $0x68] sm:$0xff] %v894_v33 }
 0x1fe PF: > { %s15_s20 = sadd.s32 1, %s1269_s20   ;;  %s1479_s18 = smov %s1265_s19 }
 0x1ff   : > { %p12_p5 = scmp.ge.s32.totalorder %s15_s20, 4   ;;  %s1480_s19 = smov %s1482_s21 }
 0x201   :  { %14 = sbr.rel (!%p12_p5) target bundleno = 2 (0x2), region = 81 }

</bundles_post_ra>
